<compile_context>
chip_gen: v7x
topology: tpu7x:2x2x1
jax: 0.10.0
libtpu: 0.0.40
codegen_flags: <defaults>
</compile_context>

<pallas_src>
import jax
import jax.numpy as jnp
from jax.experimental import pallas as pl
from jax.experimental.pallas import tpu as pltpu


def mlp_kernel(x_ref, w1_ref, b1_ref, w2_ref, b2_ref,
               w3_ref, b3_ref, w4_ref, b4_ref, o_ref):
    f32 = jnp.float32
    bf16 = jnp.bfloat16

    # In-kernel cast of the streamed f32 x tile to bf16 for the MXU (keeps HBM
    # traffic at 4 B/elem for x instead of 8 B/elem with a wrapper-side cast).
    xb = x_ref[...].astype(bf16)

    # Layer 1: Linear(D -> H) + ReLU      (Dropout = identity in eval mode)
    h = jnp.dot(xb, w1_ref[...], preferred_element_type=f32)
    h = jnp.maximum(h + b1_ref[...], 0.0)

    # Layer 2: Linear(H -> H//2) + ReLU
    h = jnp.dot(h.astype(bf16), w2_ref[...], preferred_element_type=f32)
    h = jnp.maximum(h + b2_ref[...], 0.0)

    # Layer 3: Linear(H//2 -> H//4) + ReLU
    h = jnp.dot(h.astype(bf16), w3_ref[...], preferred_element_type=f32)
    h = jnp.maximum(h + b3_ref[...], 0.0)

    # Layer 4: Linear(H//4 -> 1).  Since out_dim == 1, compute it as an f32 lane
    # reduction and store a lane-dense (1, TB) row instead of a masked (TB, 1)
    # column.  w4_ref is the (1, H//4) weight row in f32; b4 is a scalar in SMEM.
    out = jnp.sum(h * w4_ref[...], axis=-1) + b4_ref[0]          # (TB,) f32
    o_ref[0, :] = out.astype(o_ref.dtype)

    # TODO(synk): training-mode Dropout (pltpu.prng_random_bits mask) not
    # implemented; forward here matches model.eval().


def _round_up(n, m):
    return ((n + m - 1) // m) * m


def _vmem_budget_bytes(tb, D, H):
    """Rough per-call VMEM need with 2x headroom, clamped to [32 MiB, 64 MiB]."""
    x_buf = 2 * tb * D * 4                                  # double-buffered f32 x tile
    acts = 2 * tb * (H + H // 2 + H // 4) * 4               # f32 intermediates + bf16 temps
    weights = 2 * 2 * (D * H + H * (H // 2) + (H // 2) * (H // 4))   # bf16, 2 bufs each
    biases = 2 * 4 * (H + H // 2 + 2 * (H // 4) + 8)
    out_buf = 2 * 8 * tb * 4                                # (1, tb) row, 8-sublane padded
    need = x_buf + acts + weights + biases + out_buf
    return int(min(64 * 1024 * 1024, max(32 * 1024 * 1024, 2 * need)))


def mlp_predictor_forward(x, params, *, tile_b=8192):
    """Fused 4-layer MLP forward.  x: (B, D) float32 -> (B, 1) float32.

    tile_b: batch tile (multiple of 128).  Default 8192 gives MiB-scale x tiles
    (amortizes the ~0.35 us/step grid overhead); it is auto-clamped for small
    batches so the grid keeps >= 2 steps where possible (v7x megacore).
    """
    w1, b1, w2, b2, w3, b3, w4_row, b4 = params
    B, D = x.shape
    H = w1.shape[1]

    assert tile_b % 128 == 0 and tile_b >= 128, "tile_b must be a multiple of 128"

    # Clamp so small batches still get >=2 grid steps (v7x TensorCore sharding)
    # without burning work on out-of-bounds rows.  Still a multiple of 128.
    tb = min(tile_b, max(128, _round_up(pl.cdiv(B, 2), 128)))
    n_tiles = pl.cdiv(B, tb)

    bf16 = jnp.bfloat16
    # Weights are tiny and DMA'd once (constant index maps): a one-time wrapper
    # cast to bf16 halves their resident VMEM footprint and is negligible HBM.
    w1b = w1.astype(bf16)
    w2b = w2.astype(bf16)
    w3b = w3.astype(bf16)
    # w4_row stays f32: it is used in an elementwise reduce, not an MXU matmul.

    const2d = lambda i: (0, 0)   # weights/biases: same block every step -> resident

    out = pl.pallas_call(
        mlp_kernel,
        out_shape=jax.ShapeDtypeStruct((1, B), jnp.float32),
        grid=(n_tiles,),
        in_specs=[
            # x: streamed & double-buffered.  For v5e (slower HBM) consider
            # pipeline_mode=pl.Buffered(3) here if the x DMA is still exposed.
            pl.BlockSpec((tb, D), lambda i: (i, 0)),
            pl.BlockSpec(w1b.shape, const2d),
            pl.BlockSpec(b1.shape, const2d),
            pl.BlockSpec(w2b.shape, const2d),
            pl.BlockSpec(b2.shape, const2d),
            pl.BlockSpec(w3b.shape, const2d),
            pl.BlockSpec(b3.shape, const2d),
            pl.BlockSpec(w4_row.shape, const2d),
            pl.BlockSpec(memory_space=pltpu.MemorySpace.SMEM),  # b4: scalar in SMEM
        ],
        out_specs=pl.BlockSpec((1, tb), lambda i: (0, i)),       # lane-dense output row
        compiler_params=pltpu.CompilerParams(
            dimension_semantics=("parallel",),                   # megacore sharding on v7x
            vmem_limit_bytes=_vmem_budget_bytes(tb, D, H),
        ),
    )(x, w1b, b1, w2b, b2, w3b, b3, w4_row, b4)

    # Tail-tile columns >= B were never written (masked store); slice them away.
    return out[0, :B].reshape(B, 1)


def init_params(key, input_dim, hidden_dim, output_dim=1):
    """Deterministic synthetic init (PyTorch-style uniform fan-in scaling).

    Layers 1-3 stored as (in, out) = transpose of nn.Linear's (out, in).
    Layer 4 (out_dim must be 1) stored as a (1, in) weight row and (1,) bias.
    """
    assert output_dim == 1, "lane-dense final layer assumes output_dim == 1"
    dims = [input_dim, hidden_dim, hidden_dim // 2, hidden_dim // 4, output_dim]
    params = []
    for i in range(4):
        fan_in, fan_out = dims[i], dims[i + 1]
        key, kw, kb = jax.random.split(key, 3)
        bound = 1.0 / (fan_in ** 0.5)
        if i < 3:
            w = jax.random.uniform(kw, (fan_in, fan_out), jnp.float32, -bound, bound)
            b = jax.random.uniform(kb, (1, fan_out), jnp.float32, -bound, bound)
        else:
            w = jax.random.uniform(kw, (1, fan_in), jnp.float32, -bound, bound)
            b = jax.random.uniform(kb, (1,), jnp.float32, -bound, bound)
        params += [w, b]
    return tuple(params)


def reference_forward_matched(x, params):
    """Pure-JAX reference with the kernel's numerics (bf16 matmul inputs, f32 accum)."""
    w1, b1, w2, b2, w3, b3, w4_row, b4 = params
    bf16, f32 = jnp.bfloat16, jnp.float32
    h = jnp.dot(x.astype(bf16), w1.astype(bf16), preferred_element_type=f32)
    h = jnp.maximum(h + b1, 0.0)
    h = jnp.dot(h.astype(bf16), w2.astype(bf16), preferred_element_type=f32)
    h = jnp.maximum(h + b2, 0.0)
    h = jnp.dot(h.astype(bf16), w3.astype(bf16), preferred_element_type=f32)
    h = jnp.maximum(h + b3, 0.0)
    return jnp.sum(h * w4_row, axis=-1, keepdims=True) + b4


def reference_forward_f32(x, params):
    """Full-f32 reference (PyTorch eval-mode semantics)."""
    w1, b1, w2, b2, w3, b3, w4_row, b4 = params
    h = jnp.maximum(x @ w1 + b1, 0.0)
    h = jnp.maximum(h @ w2 + b2, 0.0)
    h = jnp.maximum(h @ w3 + b3, 0.0)
    return h @ w4_row.T + b4


if __name__ == "__main__":
    key = jax.random.PRNGKey(0)

    batch = 300          # deliberately not a tile multiple -> exercises masked tail
    input_dim = 64
    hidden_dim = 32      # -> hidden widths 32, 16, 8
    output_dim = 1

    key, kx = jax.random.split(key)
    x = jax.random.normal(kx, (batch, input_dim), jnp.float32)
    params = init_params(key, input_dim, hidden_dim, output_dim)

    ref_matched = reference_forward_matched(x, params)
    ref_f32 = reference_forward_f32(x, params)

    # Small explicit tile so the demo grid has several steps (3 tiles of 128,
    # last one partial -> masked boundary block).
    out_small = jax.block_until_ready(mlp_predictor_forward(x, params, tile_b=128))
    assert out_small.shape == (batch, output_dim)
    assert jnp.allclose(out_small, ref_matched, atol=1e-3, rtol=1e-3), \
        "tile_b=128: mismatch vs bf16-matched reference"
    assert jnp.allclose(out_small, ref_f32, atol=5e-2, rtol=5e-2), \
        "tile_b=128: mismatch vs f32 reference"

    # Default (large) tile: auto-clamped to 256 here -> 2 grid steps.
    out_default = jax.block_until_ready(mlp_predictor_forward(x, params))
    assert out_default.shape == (batch, output_dim)
    assert jnp.allclose(out_default, ref_matched, atol=1e-3, rtol=1e-3), \
        "default tile: mismatch vs bf16-matched reference"
    assert jnp.allclose(out_default, ref_f32, atol=5e-2, rtol=5e-2), \
        "default tile: mismatch vs f32 reference"

    print("KERNEL_OK")
</pallas_src>

<mosaic_0001>
module attributes {stable_mosaic.version = 11 : i64} {
  func.func @mlp_kernel(%arg0: i32, %arg1: memref<128x64xf32, #tpu.memory_space<vmem>>, %arg2: memref<64x32xbf16, #tpu.memory_space<vmem>>, %arg3: memref<1x32xf32, #tpu.memory_space<vmem>>, %arg4: memref<32x16xbf16, #tpu.memory_space<vmem>>, %arg5: memref<1x16xf32, #tpu.memory_space<vmem>>, %arg6: memref<16x8xbf16, #tpu.memory_space<vmem>>, %arg7: memref<1x8xf32, #tpu.memory_space<vmem>>, %arg8: memref<1x8xf32, #tpu.memory_space<vmem>>, %arg9: memref<1xf32, #tpu.memory_space<smem>>, %arg10: memref<1x128xf32, #tpu.memory_space<vmem>>) attributes {dimension_semantics = [#tpu.dimension_semantics<parallel>], iteration_bounds = array<i64: 3>, scalar_prefetch = 0 : i64, scratch_operands = 0 : i64, tpu.core_type = #tpu.core_type<tc>, window_params = [{transform_indices = @transform_0, window_bounds = array<i64: 128, 64>}, {pipeline_mode = #tpu.pipeline_mode<synchronous>, transform_indices = @transform_1, window_bounds = array<i64: 64, 32>}, {pipeline_mode = #tpu.pipeline_mode<synchronous>, transform_indices = @transform_2, window_bounds = array<i64: 1, 32>}, {pipeline_mode = #tpu.pipeline_mode<synchronous>, transform_indices = @transform_3, window_bounds = array<i64: 32, 16>}, {pipeline_mode = #tpu.pipeline_mode<synchronous>, transform_indices = @transform_4, window_bounds = array<i64: 1, 16>}, {pipeline_mode = #tpu.pipeline_mode<synchronous>, transform_indices = @transform_5, window_bounds = array<i64: 16, 8>}, {pipeline_mode = #tpu.pipeline_mode<synchronous>, transform_indices = @transform_6, window_bounds = array<i64: 1, 8>}, {pipeline_mode = #tpu.pipeline_mode<synchronous>, transform_indices = @transform_7, window_bounds = array<i64: 1, 8>}, {transform_indices = @transform_8, window_bounds = array<i64: 1>}, {transform_indices = @transform_9, window_bounds = array<i64: 1, 128>}]} {
    %c0 = arith.constant 0 : index
    %c0_0 = arith.constant 0 : index
    %0 = vector.load %arg1[%c0, %c0_0] : memref<128x64xf32, #tpu.memory_space<vmem>>, vector<128x64xf32>
    %1 = arith.truncf %0 : vector<128x64xf32> to vector<128x64xbf16>
    %c0_1 = arith.constant 0 : index
    %c0_2 = arith.constant 0 : index
    %2 = vector.load %arg2[%c0_1, %c0_2] : memref<64x32xbf16, #tpu.memory_space<vmem>>, vector<64x32xbf16>
    %cst = arith.constant dense<0.000000e+00> : vector<128x32xf32>
    %3 = tpu.matmul %1, %2, %cst {dimension_numbers = #tpu.dot_dimension_numbers<[1], [0], [0], [1], [0, 0, 1, 1], [], []>} : vector<128x64xbf16>, vector<64x32xbf16>, vector<128x32xf32> -> vector<128x32xf32>
    %c0_3 = arith.constant 0 : index
    %c0_4 = arith.constant 0 : index
    %4 = vector.load %arg3[%c0_3, %c0_4] : memref<1x32xf32, #tpu.memory_space<vmem>>, vector<1x32xf32>
    %5 = vector.broadcast %4 : vector<1x32xf32> to vector<128x32xf32>
    %6 = arith.addf %3, %5 : vector<128x32xf32>
    %cst_5 = arith.constant 0.000000e+00 : f32
    %7 = vector.broadcast %cst_5 : f32 to vector<128x32xf32>
    %8 = arith.maximumf %6, %7 : vector<128x32xf32>
    %9 = arith.truncf %8 : vector<128x32xf32> to vector<128x32xbf16>
    %c0_6 = arith.constant 0 : index
    %c0_7 = arith.constant 0 : index
    %10 = vector.load %arg4[%c0_6, %c0_7] : memref<32x16xbf16, #tpu.memory_space<vmem>>, vector<32x16xbf16>
    %cst_8 = arith.constant dense<0.000000e+00> : vector<128x16xf32>
    %11 = tpu.matmul %9, %10, %cst_8 {dimension_numbers = #tpu.dot_dimension_numbers<[1], [0], [0], [1], [0, 0, 1, 1], [], []>} : vector<128x32xbf16>, vector<32x16xbf16>, vector<128x16xf32> -> vector<128x16xf32>
    %c0_9 = arith.constant 0 : index
    %c0_10 = arith.constant 0 : index
    %12 = vector.load %arg5[%c0_9, %c0_10] : memref<1x16xf32, #tpu.memory_space<vmem>>, vector<1x16xf32>
    %13 = vector.broadcast %12 : vector<1x16xf32> to vector<128x16xf32>
    %14 = arith.addf %11, %13 : vector<128x16xf32>
    %cst_11 = arith.constant 0.000000e+00 : f32
    %15 = vector.broadcast %cst_11 : f32 to vector<128x16xf32>
    %16 = arith.maximumf %14, %15 : vector<128x16xf32>
    %17 = arith.truncf %16 : vector<128x16xf32> to vector<128x16xbf16>
    %c0_12 = arith.constant 0 : index
    %c0_13 = arith.constant 0 : index
    %18 = vector.load %arg6[%c0_12, %c0_13] : memref<16x8xbf16, #tpu.memory_space<vmem>>, vector<16x8xbf16>
    %cst_14 = arith.constant dense<0.000000e+00> : vector<128x8xf32>
    %19 = tpu.matmul %17, %18, %cst_14 {dimension_numbers = #tpu.dot_dimension_numbers<[1], [0], [0], [1], [0, 0, 1, 1], [], []>} : vector<128x16xbf16>, vector<16x8xbf16>, vector<128x8xf32> -> vector<128x8xf32>
    %c0_15 = arith.constant 0 : index
    %c0_16 = arith.constant 0 : index
    %20 = vector.load %arg7[%c0_15, %c0_16] : memref<1x8xf32, #tpu.memory_space<vmem>>, vector<1x8xf32>
    %21 = vector.broadcast %20 : vector<1x8xf32> to vector<128x8xf32>
    %22 = arith.addf %19, %21 : vector<128x8xf32>
    %cst_17 = arith.constant 0.000000e+00 : f32
    %23 = vector.broadcast %cst_17 : f32 to vector<128x8xf32>
    %24 = arith.maximumf %22, %23 : vector<128x8xf32>
    %c0_18 = arith.constant 0 : index
    %c0_19 = arith.constant 0 : index
    %25 = vector.load %arg8[%c0_18, %c0_19] : memref<1x8xf32, #tpu.memory_space<vmem>>, vector<1x8xf32>
    %26 = vector.broadcast %25 : vector<1x8xf32> to vector<128x8xf32>
    %27 = arith.mulf %24, %26 : vector<128x8xf32>
    %cst_20 = arith.constant dense<0.000000e+00> : vector<128xf32>
    %28 = vector.multi_reduction <add>, %27, %cst_20 [1] : vector<128x8xf32> to vector<128xf32>
    %c0_21 = arith.constant 0 : index
    %29 = memref.load %arg9[%c0_21] : memref<1xf32, #tpu.memory_space<smem>>
    %30 = vector.broadcast %29 : f32 to vector<128xf32>
    %31 = arith.addf %28, %30 : vector<128xf32>
    %c0_22 = arith.constant 0 : index
    %c0_23 = arith.constant 0 : index
    %32 = vector.load %arg10[%c0_22, %c0_23] : memref<1x128xf32, #tpu.memory_space<vmem>>, vector<1x128xf32>
    %33 = vector.shape_cast %32 : vector<1x128xf32> to vector<128xf32>
    %34 = vector.shape_cast %31 : vector<128xf32> to vector<1x128xf32>
    tpu.vector_store %arg10[%c0_22, %c0_23], %34 {strides = array<i32>} : memref<1x128xf32, #tpu.memory_space<vmem>>, vector<1x128xf32>,
    return
  }
  func.func @transform_0(%arg0: i32) -> (i32, i32) {
    %c0_i32 = arith.constant 0 : i32
    %c0_i32_0 = arith.constant 0 : i32
    return %arg0, %c0_i32 : i32, i32
  }
  func.func @transform_1(%arg0: i32) -> (i32, i32) {
    %c0_i32 = arith.constant 0 : i32
    %c0_i32_0 = arith.constant 0 : i32
    %c0_i32_1 = arith.constant 0 : i32
    return %c0_i32, %c0_i32_0 : i32, i32
  }
  func.func @transform_2(%arg0: i32) -> (i32, i32) {
    %c0_i32 = arith.constant 0 : i32
    %c0_i32_0 = arith.constant 0 : i32
    %c0_i32_1 = arith.constant 0 : i32
    return %c0_i32, %c0_i32_0 : i32, i32
  }
  func.func @transform_3(%arg0: i32) -> (i32, i32) {
    %c0_i32 = arith.constant 0 : i32
    %c0_i32_0 = arith.constant 0 : i32
    %c0_i32_1 = arith.constant 0 : i32
    return %c0_i32, %c0_i32_0 : i32, i32
  }
  func.func @transform_4(%arg0: i32) -> (i32, i32) {
    %c0_i32 = arith.constant 0 : i32
    %c0_i32_0 = arith.constant 0 : i32
    %c0_i32_1 = arith.constant 0 : i32
    return %c0_i32, %c0_i32_0 : i32, i32
  }
  func.func @transform_5(%arg0: i32) -> (i32, i32) {
    %c0_i32 = arith.constant 0 : i32
    %c0_i32_0 = arith.constant 0 : i32
    %c0_i32_1 = arith.constant 0 : i32
    return %c0_i32, %c0_i32_0 : i32, i32
  }
  func.func @transform_6(%arg0: i32) -> (i32, i32) {
    %c0_i32 = arith.constant 0 : i32
    %c0_i32_0 = arith.constant 0 : i32
    %c0_i32_1 = arith.constant 0 : i32
    return %c0_i32, %c0_i32_0 : i32, i32
  }
  func.func @transform_7(%arg0: i32) -> (i32, i32) {
    %c0_i32 = arith.constant 0 : i32
    %c0_i32_0 = arith.constant 0 : i32
    %c0_i32_1 = arith.constant 0 : i32
    return %c0_i32, %c0_i32_0 : i32, i32
  }
  func.func @transform_8(%arg0: i32) -> i32 {
    %c0_i32 = arith.constant 0 : i32
    %c0_i32_0 = arith.constant 0 : i32
    return %c0_i32 : i32
  }
  func.func @transform_9(%arg0: i32) -> (i32, i32) {
    %c0_i32 = arith.constant 0 : i32
    %c0_i32_0 = arith.constant 0 : i32
    return %c0_i32, %arg0 : i32, i32
  }
}

</mosaic_0001>

<bundles_post_ra>
// kernel: tpu_custom_call.1
= control target key start
LH: loop header
LB: loop body
LE: loop exit
PB: predicated region body
PF: predicated region fallthrough
CT: control target
= control target key end

     0   :  { %s1766_s0 = inlined_call_operand.vmem [shape: f32[300,64], index: 0, kind: input, shape index: {}]   ;;  %s1767_s1 = inlined_call_operand.vmem [shape: bf16[64,32], index: 1, kind: input, shape index: {}]   ;;  %s1768_s2 = inlined_call_operand.vmem [shape: f32[1,32], index: 2, kind: input, shape index: {}]   ;;  %s1769_s3 = inlined_call_operand.vmem [shape: bf16[32,16], index: 3, kind: input, shape index: {}]   ;;  %s1770_s4 = inlined_call_operand.vmem [shape: f32[1,16], index: 4, kind: input, shape index: {}]   ;;  %s1771_s5 = inlined_call_operand.vmem [shape: bf16[16,8], index: 5, kind: input, shape index: {}]   ;;  %s1772_s6 = inlined_call_operand.vmem [shape: f32[1,8], index: 6, kind: input, shape index: {}]   ;;  %s1773_s7 = inlined_call_operand.vmem [shape: f32[1,8], index: 7, kind: input, shape index: {}]   ;;  %s1774_s8 = inlined_call_operand.<no memory space> [shape: f32[1], index: 8, kind: input, shape index: {}]   ;;  %s1775_s9 = inlined_call_operand.hbm [shape: f32[1,300], index: 9, kind: output, shape index: {}]  }
   0x1   :  { %14 = sst [smem:[#allocation2]] %s1774_s8 }
   0x2   :  { %15 = vsyncpa [#allocation4], 0 }
   0x3   :  { %17 = vsyncpa [#allocation4 + $0x1], 0  ;;  %s1477_s11 = smov 0   ;;  %s1479_s12 = smov 0  }
   0x4   :  { %s1481_s13 = smov 0   ;;  %s1483_s14 = smov 0  }
   0x5 LB: > { %s1171_s8 = sadd.s32 4294967295, %s1421_s14   ;;  %s1172_s15 = sadd.s32 4294967294, %s1421_s14   ;;  %s1421_s14 = sphi %s1483_s14, %s1781_s14   ;;  %s1417_s13 = sphi %s1481_s13, %s1780_s13   ;;  %s1413_s12 = sphi %s1479_s12, %s1779_s12   ;;  %s1409_s11 = sphi %s1477_s11, %s1778_s11  }
   0x6   : > { %s1500_s16 = sadd.s32 1, %s1421_s14   ;;  %s224_s17 = sadd.s32 1, %s1417_s13 }
   0x7   : > { %s221_s18 = ssub.s32 %s1421_s14, %s1500_s16  ;;  %p234_p0 = scmp.ne.s32.totalorder %s1417_s13, %s1413_s12 }
   0x8   : > { %p222_p1 = scmp.eq.s32.totalorder %s221_s18, 0  ;;  %p235_p2 = scmp.eq.s32.totalorder %s1171_s8, 2 }
   0x9   : > { %p240_p3 = scmp.ne.s32.totalorder %s1413_s12, %s1409_s11  ;;  %p241_p4 = scmp.eq.s32.totalorder %s1172_s15, 2 }
   0xa   : > { %s1510_s19 = scalar_select %p222_p1, %s1417_s13, %s224_s17  }
   0xb   : > { %p1512_p5 = por %p235_p2, %p234_p0  ;;  %p1516_p6 = por %p241_p4, %p240_p3 }
   0xc   : > { %p1175_p7 = scmp.ge.s32.totalorder %s1421_s14, 1  ;;  %p300_p8 = scmp.lt.s32.totalorder %s1421_s14, 4 }
   0xe   : > { %p301_p9 = pnand %p1175_p7, %p300_p8 }
   0xf   : > { %v1352_v0 = vld [vmem:[%s1767_s1] sm:$0xff] (!%p301_p9)   ;;  %s1525_s24 = sshll.u32 (!%p301_p9), %s1171_s8, 4  ;;  %v1353_v1 = vld [vmem:[%s1767_s1 + $0x8] sm:$0xff] (!%p301_p9)   ;;  %v1354_v2 = vld [vmem:[%s1767_s1 + $0x10] sm:$0xff] (!%p301_p9)   ;;  %vm417_vm0 = vcmask (!%p301_p9), 523264   ;;  %vm586_vm1 = vcmask (!%p301_p9), 261120  }
  0x10   : > { %304 = sbr.rel (%p301_p9) target bundleno = 887 (0x377), region = 56  ;;  %p344_p10 = scmp.lt.s32.totalorder (!%p301_p9), %s1525_s24, 37  ;;  %1247 = vmatprep.subr.bf16.mxu0 (!%p301_p9), %v1352_v0  ;;  %v1356_v3 = vld [vmem:[%s1769_s3] sm:$0xff] (!%p301_p9)   ;;  %v1357_v4 = vld [vmem:[%s1769_s3 + $0x8] sm:$0xff] (!%p301_p9)   ;;  %v1355_v7 = vld [vmem:[%s1767_s1 + $0x18] sm:$0xff] (!%p301_p9)   ;;  %vm747_vm2 = vcmask (!%p301_p9), 130048  }
  0x11   : > { %1248 = vmatpush3.bf16.msra.mxu0 (!%p301_p9), %v1352_v0  ;;  %1309 = vmatprep.subr.bf16.mxu1 (!%p301_p9), %v1356_v3  ;;  %v1358_v30 = vld [vmem:[%s1771_s5] sm:$0xff] (!%p301_p9)   ;;  %vm908_vm3 = vcmask (!%p301_p9), 64512   ;;  %s957_s23 = sld [smem:[#allocation2]] (!%p301_p9)  ;;  %vm1002_vm4 = vcmask (!%p301_p9), 130112   ;;  %vm1009_vm5 = vcmask (!%p301_p9), 195712   ;;  %vm1016_vm6 = vcmask (!%p301_p9), 261312   ;;  %s1722_s30 = scalar_lea.hbm (!%p301_p9), %s1775_s9, %s1525_s24 }
  0x12   : > { %1249 = vmatprep.subr.bf16.mxu0 (!%p301_p9), %v1353_v1  ;;  %1311 = vmatpush3.bf16.msra.mxu1 (!%p301_p9), %v1356_v3  ;;  %v1178_v31 = vld [vmem:[%s1768_s2] ss:$0 sm:$0xff] (!%p301_p9)  ;;  %vm1023_vm7 = vcmask (!%p301_p9), 326912   ;;  %vm1030_vm8 = vcmask (!%p301_p9), 392512   ;;  %vm1037_vm9 = vcmask (!%p301_p9), 458112   ;;  %vm1044_vm10 = vcmask (!%p301_p9), 523712  }
  0x13   : > { %1310 = vmatprep.subr.bf16.mxu1 (!%p301_p9), %v1357_v4  ;;  %vm1051_vm11 = vcmask (!%p301_p9), 589312   ;;  %vm1058_vm12 = vcmask (!%p301_p9), 654912   ;;  %vm1065_vm13 = vcmask (!%p301_p9), 720512   ;;  %vm1072_vm14 = vcmask (!%p301_p9), 786112   ;;  %s337_s25 = sand.u32 (!%p301_p9), 1, %s1413_s12   ;;  %s1423_s15 = smov (!%p301_p9), [#allocation3]  }
  0x14   : > { %vm1079_vm15 = vcmask (!%p301_p9), 851712   ;;  %s338_s26 = scalar_lea.vmem (!%p301_p9), [#allocation3], %s337_s25  ;;  %s1105_s10 = scalar_lea.sflag (!%p301_p9), [#allocation4], %s337_s25 }
  0x15   : > { %1250 = vmatpush3.bf16.msra.mxu0 (!%p301_p9), %v1353_v1  ;;  %s1117_s27 = sshll.u32 (!%p301_p9), %s338_s26, 4  ;;  %s1363_s17 = sshll.u32 (!%p301_p9), %s1423_s15, 4  ;;  %s1724_s27 = int_to_ptr.vmem [resolvable:$true] %s1117_s27  ;;  %s1364_s17 = int_to_ptr.vmem [resolvable:$false] %s1363_s17 }
  0x16   : > { %1251 = vmatprep.subr.bf16.mxu0 (!%p301_p9), %v1354_v2  ;;  %1312 = vmatpush3.bf16.msra.mxu1 (!%p301_p9), %v1357_v4  ;;  %p1366_p0 = scmp.lt.s32.totalorder (!%p301_p9), %s1724_s27, %s1364_s17 }
  0x17   : > { %s345_s29 = scalar_select %p344_p10, %s1525_s24, 37  ;;  %1291 = vmatprep.subr.bf16.mxu1 %v1358_v30 }
  0x19   : > { %s1177_s8 = sshll.u32 %s345_s29, 3  ;;  %1252 = vmatpush3.bf16.msra.mxu0 %v1354_v2 }
  0x1a   : > { %s1541_s18 = scalar_lea.vmem %s1766_s0, %s1177_s8  ;;  %1253 = vmatprep.subr.bf16.mxu0 %v1355_v7  ;;  %s1359_s8 = scalar_lea.vmem %s1724_s27, 16 }
  0x1b   : > { %v354_v5 = vld [vmem:[%s1541_s18] sm:$0xff]  ;;  %v355_v6 = vld [vmem:[%s1541_s18 + $0x8] sm:$0xff]  ;;  %v356_v9 = vld [vmem:[%s1541_s18 + $0x10] sm:$0xff]  ;;  %p1360_p11 = scmp.ne.s32.totalorder %s1724_s27, %s1359_s8 }
  0x1c   : > { %v370_v8 = vpack.c.bf16 %v355_v6, %v354_v5  ;;  %v357_v10 = vld [vmem:[%s1541_s18 + $0x18] sm:$0xff]  ;;  %v358_v11 = vld [vmem:[%s1541_s18 + $0x20] sm:$0xff]  ;;  %v359_v12 = vld [vmem:[%s1541_s18 + $0x28] sm:$0xff] }
  0x1d   : > { %v371_v13 = vpack.c.bf16 %v357_v10, %v356_v9  ;;  %1254 = vmatpush3.bf16.msra.mxu0 %v1355_v7  ;;  %v372_v14 = vpack.c.bf16 %v359_v12, %v358_v11  ;;  %v360_v15 = vld [vmem:[%s1541_s18 + $0x30] sm:$0xff]  ;;  %v361_v16 = vld [vmem:[%s1541_s18 + $0x38] sm:$0xff]  ;;  %v362_v17 = vld [vmem:[%s1541_s18 + $0x40] sm:$0xff]  ;;  %p1361_p12 = pnand %p1360_p11, %p1512_p5 }
  0x1e   : > { %1255 = vmatprep.mubr.msk.bf16.mxu0 %vm417_vm0, %v370_v8  ;;  %1271 = vmatprep.subr.bf16.mxu0 %v1356_v3  ;;  %v363_v18 = vld [vmem:[%s1541_s18 + $0x48] sm:$0xff]  ;;  %v373_v19 = vpack.c.bf16 %v361_v16, %v360_v15  ;;  %v364_v21 = vld [vmem:[%s1541_s18 + $0x50] sm:$0xff]  ;;  %v365_v22 = vld [vmem:[%s1541_s18 + $0x58] sm:$0xff] }
  0x1f   : > { %v374_v20 = vpack.c.bf16 %v363_v18, %v362_v17  ;;  %v366_v23 = vld [vmem:[%s1541_s18 + $0x60] sm:$0xff]  ;;  %v367_v24 = vld [vmem:[%s1541_s18 + $0x68] sm:$0xff]  ;;  %v375_v25 = vpack.c.bf16 %v365_v22, %v364_v21  ;;  %v368_v27 = vld [vmem:[%s1541_s18 + $0x70] sm:$0xff]  ;;  %p1362_p13 = pneg %p1361_p12 }
  0x20   : > { %1256 = vmatmul.mubr.msk.bf16.vlgmr.msra.gmra.mrb[0].mxu0 %vm417_vm0, %v371_v13  ;;  %v376_v26 = vpack.c.bf16 %v367_v24, %v366_v23  ;;  %v369_v28 = vld [vmem:[%s1541_s18 + $0x78] sm:$0xff]  ;;  %v1191_v24 = vld [vmem:[%s1770_s4] ss:$0 sm:$0xff]  ;;  %s1365_s18 = scalar_lea.vmem %s1364_s17, 32 }
  0x21   : > { %1259 = vmatprep.mubr.msk.bf16.mxu0 %vm417_vm0, %v372_v14  ;;  %1272 = vmatpush3.bf16.msra.mxu0 %v1356_v3  ;;  %v377_v29 = vpack.c.bf16 %v369_v28, %v368_v27  ;;  %p1367_p1 = scmp.lt.s32.totalorder %s1365_s18, %s1359_s8 }
  0x22   : > { %1273 = vmatprep.subr.bf16.mxu0 %v1357_v4 }
  0x23   : > { %p1368_p2 = por %p1367_p1, %p1366_p0 }
  0x25   : > { %1274 = vmatpush3.bf16.msra.mxu0 %v1357_v4  ;;  %p1369_p3 = pnand %p1368_p2, %p1362_p13 }
  0x28   : > { %1260 = vmatmul.mubr.msk.bf16.gmra.mrb[4].mxu0 %vm417_vm0, %v373_v19 }
  0x29   : > { %1263 = vmatprep.mubr.msk.bf16.mxu0 %vm417_vm0, %v374_v20 }
  0x30   : > { %1264 = vmatmul.mubr.msk.bf16.gmra.mrb[8].mxu0 %vm417_vm0, %v375_v25 }
  0x31   : > { %1267 = vmatprep.mubr.msk.bf16.mxu0 %vm417_vm0, %v376_v26 }
  0x38   : > { %1268 = vmatmul.mubr.msk.bf16.gmra.mrb[12].mxu0 %vm417_vm0, %v377_v29  ;;  %vm1086_vm0 = vcmask 917312  }
  0xf3   : > { %v1257_v32 = vpop.f32.mrb[0].mxu0 }
  0xf4   : > { %v485_v33 = vadd.f32 %v1257_v32, %v1178_v31  ;;  %v476_v34 = vpop.f32.mrb[1].mxu0 }
  0xf5   : > { %v477_v35 = vadd.f32 %v1178_v31, %v476_v34  ;;  %v1258_v36 = vpop.f32.mrb[2].mxu0 }
  0xf6   : > { %v488_v37 = vadd.f32 %v1258_v36, %v1178_v31  ;;  %v479_v38 = vpop.f32.mrb[3].mxu0  ;;  %v541_v40 = vmax.f32 %v485_v33, 0.0 }
  0xf7   : > { %v480_v39 = vadd.f32 %v1178_v31, %v479_v38  ;;  %v539_v42 = vmax.f32 %v477_v35, 0.0 }
  0xf8   : > { %v542_v41 = vmax.f32 %v488_v37, 0.0 }
  0xf9   : > { %v540_v43 = vmax.f32 %v480_v39, 0.0 }
  0xfa   : > { %v556_v44 = vpack.c.bf16 %v542_v41, %v541_v40 }
  0xfb   : > { %v555_v45 = vpack.c.bf16 %v540_v43, %v539_v42  ;;  %v1261_v46 = vpop.f32.mrb[4].mxu0 }
  0xfc   : > { %v501_v47 = vadd.f32 %v1261_v46, %v1178_v31  ;;  %v492_v48 = vpop.f32.mrb[5].mxu0 }
  0xfd   : > { %v493_v49 = vadd.f32 %v1178_v31, %v492_v48  ;;  %v1262_v50 = vpop.f32.mrb[6].mxu0  ;;  %1275 = vmatprep.mubr.msk.bf16.mxu0 %vm586_vm1, %v555_v45 }
  0xfe   : > { %v504_v51 = vadd.f32 %v1262_v50, %v1178_v31  ;;  %v495_v52 = vpop.f32.mrb[7].mxu0  ;;  %1276 = vmatmul.mubr.msk.bf16.vlgmr.msra.gmra.mrb[16].mxu0 %vm586_vm1, %v556_v44  ;;  %v545_v54 = vmax.f32 %v501_v47, 0.0 }
  0xff   : > { %v496_v53 = vadd.f32 %v1178_v31, %v495_v52  ;;  %v543_v56 = vmax.f32 %v493_v49, 0.0 }
 0x100   : > { %v546_v55 = vmax.f32 %v504_v51, 0.0 }
 0x101   : > { %v544_v57 = vmax.f32 %v496_v53, 0.0 }
 0x102   : > { %v558_v58 = vpack.c.bf16 %v546_v55, %v545_v54 }
 0x103   : > { %v1265_v59 = vpop.f32.mrb[8].mxu0  ;;  %v557_v60 = vpack.c.bf16 %v544_v57, %v543_v56 }
 0x104   : > { %v517_v61 = vadd.f32 %v1265_v59, %v1178_v31  ;;  %v508_v62 = vpop.f32.mrb[9].mxu0 }
 0x105   : > { %v509_v63 = vadd.f32 %v1178_v31, %v508_v62  ;;  %v1266_v0 = vpop.f32.mrb[10].mxu0  ;;  %1279 = vmatprep.mubr.msk.bf16.mxu1 %vm586_vm1, %v557_v60 }
 0x106   : > { %v520_v1 = vadd.f32 %v1266_v0, %v1178_v31  ;;  %v511_v2 = vpop.f32.mrb[11].mxu0  ;;  %1280 = vmatmul.mubr.msk.bf16.vlgmr.msra.gmra.mrb[0].mxu1 %vm586_vm1, %v558_v58  ;;  %v549_v4 = vmax.f32 %v517_v61, 0.0 }
 0x107   : > { %v512_v3 = vadd.f32 %v1178_v31, %v511_v2  ;;  %1292 = vmatpush3.bf16.msra.mxu1 %v1358_v30  ;;  %v547_v6 = vmax.f32 %v509_v63, 0.0 }
 0x108   : > { %v550_v5 = vmax.f32 %v520_v1, 0.0 }
 0x109   : > { %v548_v7 = vmax.f32 %v512_v3, 0.0 }
 0x10a   : > { %v560_v8 = vpack.c.bf16 %v550_v5, %v549_v4 }
 0x10b   : > { %v559_v9 = vpack.c.bf16 %v548_v7, %v547_v6  ;;  %v1269_v10 = vpop.f32.mrb[12].mxu0 }
 0x10c   : > { %v533_v11 = vadd.f32 %v1269_v10, %v1178_v31  ;;  %v524_v12 = vpop.f32.mrb[13].mxu0 }
 0x10d   : > { %v525_v13 = vadd.f32 %v1178_v31, %v524_v12  ;;  %v1270_v14 = vpop.f32.mrb[14].mxu0  ;;  %1283 = vmatprep.mubr.msk.bf16.mxu1 %vm586_vm1, %v559_v9 }
 0x10e   : > { %v536_v15 = vadd.f32 %v1270_v14, %v1178_v31  ;;  %v527_v16 = vpop.f32.mrb[15].mxu0  ;;  %1284 = vmatmul.mubr.msk.bf16.gmra.mrb[4].mxu1 %vm586_vm1, %v560_v8  ;;  %v553_v18 = vmax.f32 %v533_v11, 0.0 }
 0x10f   : > { %v528_v17 = vadd.f32 %v1178_v31, %v527_v16  ;;  %v551_v20 = vmax.f32 %v525_v13, 0.0 }
 0x110   : > { %v554_v19 = vmax.f32 %v536_v15, 0.0 }
 0x111   : > { %v552_v21 = vmax.f32 %v528_v17, 0.0  ;;  %v1601_v17 = vld [vmem:[%s1772_s6] ss:$0 sm:$0xff] }
 0x112   : > { %v562_v22 = vpack.c.bf16 %v554_v19, %v553_v18 }
 0x113   : > { %v561_v23 = vpack.c.bf16 %v552_v21, %v551_v20 }
 0x115   : > { %1287 = vmatprep.mubr.msk.bf16.mxu1 %vm586_vm1, %v561_v23  ;;  %v1608_v23 = vld [vmem:[%s1773_s7] ss:$0 sm:$0xff] }
 0x116   : > { %1288 = vmatmul.mubr.msk.bf16.gmra.mrb[8].mxu1 %vm586_vm1, %v562_v22  ;;  %vm1093_vm1 = vcmask 982912  }
 0x1d1   : > { %v1277_v25 = vpop.f32.mrb[16].mxu0 }
 0x1d2   : > { %v654_v26 = vadd.f32 %v1277_v25, %v1191_v24  ;;  %v645_v27 = vpop.f32.mrb[17].mxu0 }
 0x1d3   : > { %v646_v28 = vadd.f32 %v1191_v24, %v645_v27  ;;  %v1278_v29 = vpop.f32.mrb[18].mxu0 }
 0x1d4   : > { %v657_v30 = vadd.f32 %v1278_v29, %v1191_v24  ;;  %v648_v31 = vpop.f32.mrb[19].mxu0  ;;  %v710_v33 = vmax.f32 %v654_v26, 0.0 }
 0x1d5   : > { %v649_v32 = vadd.f32 %v1191_v24, %v648_v31  ;;  %v708_v35 = vmax.f32 %v646_v28, 0.0 }
 0x1d6   : > { %v711_v34 = vmax.f32 %v657_v30, 0.0 }
 0x1d7   : > { %v709_v36 = vmax.f32 %v649_v32, 0.0 }
 0x1d8   : > { %v725_v37 = vpack.c.bf16 %v711_v34, %v710_v33 }
 0x1d9   : > { %v724_v38 = vpack.c.bf16 %v709_v36, %v708_v35  ;;  %v1281_v39 = vpop.f32.mrb[0].mxu1 }
 0x1da   : > { %v670_v40 = vadd.f32 %v1281_v39, %v1191_v24  ;;  %v661_v41 = vpop.f32.mrb[1].mxu1 }
 0x1db   : > { %v662_v42 = vadd.f32 %v1191_v24, %v661_v41  ;;  %v1282_v43 = vpop.f32.mrb[2].mxu1  ;;  %1293 = vmatprep.mubr.msk.bf16.mxu1 %vm747_vm2, %v724_v38 }
 0x1dc   : > { %v673_v44 = vadd.f32 %v1282_v43, %v1191_v24  ;;  %v664_v45 = vpop.f32.mrb[3].mxu1  ;;  %1294 = vmatmul.mubr.msk.bf16.vlgmr.msra.gmra.mrb[12].mxu1 %vm747_vm2, %v725_v37  ;;  %v714_v47 = vmax.f32 %v670_v40, 0.0 }
 0x1dd   : > { %v665_v46 = vadd.f32 %v1191_v24, %v664_v45  ;;  %v712_v49 = vmax.f32 %v662_v42, 0.0 }
 0x1de   : > { %v715_v48 = vmax.f32 %v673_v44, 0.0 }
 0x1df   : > { %v713_v50 = vmax.f32 %v665_v46, 0.0 }
 0x1e0   : > { %v727_v51 = vpack.c.bf16 %v715_v48, %v714_v47 }
 0x1e1   : > { %v726_v52 = vpack.c.bf16 %v713_v50, %v712_v49  ;;  %v1285_v53 = vpop.f32.mrb[4].mxu1 }
 0x1e2   : > { %v686_v54 = vadd.f32 %v1285_v53, %v1191_v24  ;;  %v677_v55 = vpop.f32.mrb[5].mxu1 }
 0x1e3   : > { %v678_v56 = vadd.f32 %v1191_v24, %v677_v55  ;;  %v1286_v57 = vpop.f32.mrb[6].mxu1  ;;  %1297 = vmatprep.mubr.msk.bf16.mxu1 %vm747_vm2, %v726_v52 }
 0x1e4   : > { %v689_v58 = vadd.f32 %v1286_v57, %v1191_v24  ;;  %v680_v59 = vpop.f32.mrb[7].mxu1  ;;  %1298 = vmatmul.mubr.msk.bf16.gmra.mrb[16].mxu1 %vm747_vm2, %v727_v51  ;;  %v718_v61 = vmax.f32 %v686_v54, 0.0 }
 0x1e5   : > { %v681_v60 = vadd.f32 %v1191_v24, %v680_v59  ;;  %v716_v63 = vmax.f32 %v678_v56, 0.0 }
 0x1e6   : > { %v719_v62 = vmax.f32 %v689_v58, 0.0 }
 0x1e7   : > { %v717_v0 = vmax.f32 %v681_v60, 0.0 }
 0x1e8   : > { %v729_v1 = vpack.c.bf16 %v719_v62, %v718_v61 }
 0x1e9   : > { %v728_v2 = vpack.c.bf16 %v717_v0, %v716_v63  ;;  %v1289_v3 = vpop.f32.mrb[8].mxu1 }
 0x1ea   : > { %v702_v4 = vadd.f32 %v1289_v3, %v1191_v24  ;;  %v693_v5 = vpop.f32.mrb[9].mxu1 }
 0x1eb   : > { %v694_v6 = vadd.f32 %v1191_v24, %v693_v5  ;;  %v1290_v7 = vpop.f32.mrb[10].mxu1  ;;  %1301 = vmatprep.mubr.msk.bf16.mxu1 %vm747_vm2, %v728_v2 }
 0x1ec   : > { %v705_v8 = vadd.f32 %v1290_v7, %v1191_v24  ;;  %v696_v9 = vpop.f32.mrb[11].mxu1  ;;  %1302 = vmatmul.mubr.msk.bf16.gmra.mrb[20].mxu1 %vm747_vm2, %v729_v1  ;;  %v722_v11 = vmax.f32 %v702_v4, 0.0 }
 0x1ed   : > { %v697_v10 = vadd.f32 %v1191_v24, %v696_v9  ;;  %v720_v13 = vmax.f32 %v694_v6, 0.0 }
 0x1ee   : > { %v723_v12 = vmax.f32 %v705_v8, 0.0 }
 0x1ef   : > { %v721_v14 = vmax.f32 %v697_v10, 0.0 }
 0x1f0   : > { %v731_v15 = vpack.c.bf16 %v723_v12, %v722_v11 }
 0x1f1   : > { %v730_v16 = vpack.c.bf16 %v721_v14, %v720_v13 }
 0x1f3   : > { %1305 = vmatprep.mubr.msk.bf16.mxu1 %vm747_vm2, %v730_v16 }
 0x1f4   : > { %1306 = vmatmul.mubr.msk.bf16.gmra.mrb[24].mxu1 %vm747_vm2, %v731_v15  ;;  %vm1100_vm2 = vcmask 1048512  }
 0x2af   : > { %v1295_v18 = vpop.f32.mrb[12].mxu1 }
 0x2b0   : > { %v815_v19 = vadd.f32 %v1295_v18, %v1601_v17  ;;  %v806_v20 = vpop.f32.mrb[13].mxu1 }
 0x2b1   : > { %v807_v21 = vadd.f32 %v1601_v17, %v806_v20  ;;  %v1296_v22 = vpop.f32.mrb[14].mxu1 }
 0x2b2   : > { %v871_v24 = vmax.f32 %v815_v19, 0.0  ;;  %v818_v25 = vadd.f32 %v1296_v22, %v1601_v17  ;;  %v809_v26 = vpop.f32.mrb[15].mxu1 }
 0x2b3   : > { %v869_v27 = vmax.f32 %v807_v21, 0.0  ;;  %v810_v28 = vadd.f32 %v1601_v17, %v809_v26 }
 0x2b4   : > { %v872_v29 = vmax.f32 %v818_v25, 0.0  ;;  %v894_v30 = vmul.f32 %v1608_v23, %v871_v24 }
 0x2b5   : > { %v870_v31 = vmax.f32 %v810_v28, 0.0  ;;  %v892_v32 = vmul.f32 %v1608_v23, %v869_v27 }
 0x2b6   : > { %v915_v33 = vsel %vm908_vm3, %v894_v30, 0.0  ;;  %v895_v34 = vmul.f32 %v1608_v23, %v872_v29 }
 0x2b7   : > { %916 = vadd.xlane.f32.xlu1 %v915_v33  ;;  %v1299_v35 = vpop.f32.mrb[16].mxu1  ;;  %v909_v36 = vsel %vm908_vm3, %v892_v32, 0.0  ;;  %v893_v37 = vmul.f32 %v1608_v23, %v870_v31 }
 0x2b8   : > { %v831_v38 = vadd.f32 %v1299_v35, %v1601_v17  ;;  %v822_v39 = vpop.f32.mrb[17].mxu1  ;;  %910 = vadd.xlane.f32.xlu0 %v909_v36  ;;  %v918_v45 = vsel %vm908_vm3, %v895_v34, 0.0  ;;  %v991_v36 = vlaneseq }
 0x2b9   : > { %v823_v40 = vadd.f32 %v1601_v17, %v822_v39  ;;  %v1300_v41 = vpop.f32.mrb[18].mxu1  ;;  %v912_v48 = vsel %vm908_vm3, %v893_v37, 0.0 }
 0x2ba   : > { %v875_v42 = vmax.f32 %v831_v38, 0.0  ;;  %v834_v43 = vadd.f32 %v1300_v41, %v1601_v17  ;;  %v825_v44 = vpop.f32.mrb[19].mxu1  ;;  %v1656_v37 = vand.u32 127, %v991_v36 }
 0x2bb   : > { %v873_v46 = vmax.f32 %v823_v40, 0.0  ;;  %v826_v47 = vadd.f32 %v1601_v17, %v825_v44  ;;  %919 = vadd.xlane.f32.xlu1 %v918_v45  ;;  %v1659_v40 = vshrl.u32 %v991_v36, 7 }
 0x2bc   : > { %v876_v49 = vmax.f32 %v834_v43, 0.0  ;;  %913 = vadd.xlane.f32.xlu0 %v912_v48  ;;  %v898_v50 = vmul.f32 %v1608_v23, %v875_v42  ;;  %v997_v39 = vadd.s32 4294967288, %v1656_v37  ;;  %v1661_v42 = vstv %s957_s23 }
 0x2bd   : > { %v874_v51 = vmax.f32 %v826_v47, 0.0  ;;  %v896_v55 = vmul.f32 %v1608_v23, %v873_v46  ;;  %v995_v44 = vsub.s32 %v1656_v37, %v1659_v40 }
 0x2be   : > { %v927_v52 = vsel %vm908_vm3, %v898_v50, 0.0  ;;  %v899_v53 = vmul.f32 %v1608_v23, %v876_v49  ;;  %v1000_v43 = vsub.s32 %v997_v39, %v1659_v40  ;;  %v1011_v50 = vadd.s32 4294967272, %v1656_v37 }
 0x2bf   : > { %v1303_v54 = vpop.f32.mrb[20].mxu1  ;;  %v897_v59 = vmul.f32 %v1608_v23, %v874_v51  ;;  %v921_v3 = vsel %vm908_vm3, %v896_v55, 0.0 }
 0x2c0   : > { %v847_v56 = vadd.f32 %v1303_v54, %v1601_v17  ;;  %v838_v57 = vpop.f32.mrb[21].mxu1  ;;  %928 = vadd.xlane.f32.xlu0 %v927_v52  ;;  %v930_v58 = vsel %vm908_vm3, %v899_v53, 0.0  ;;  %v1018_v53 = vadd.s32 4294967264, %v1656_v37 }
 0x2c1   : > { %v839_v60 = vadd.f32 %v1601_v17, %v838_v57  ;;  %931 = vadd.xlane.f32.xlu1 %v930_v58  ;;  %v1304_v61 = vpop.f32.mrb[22].mxu1  ;;  %v924_v5 = vsel %vm908_vm3, %v897_v59, 0.0  ;;  %v1032_v57 = vadd.s32 4294967248, %v1656_v37  ;;  %v1014_v59 = vsub.s32 %v1011_v50, %v1659_v40 }
 0x2c2   : > { %v879_v62 = vmax.f32 %v847_v56, 0.0  ;;  %v850_v63 = vadd.f32 %v1304_v61, %v1601_v17  ;;  %v841_v0 = vpop.f32.mrb[23].mxu1  ;;  %v1025_v56 = vadd.s32 4294967256, %v1656_v37 }
 0x2c3   : > { %v877_v1 = vmax.f32 %v839_v60, 0.0  ;;  %v842_v2 = vadd.f32 %v1601_v17, %v841_v0  ;;  %v1039_v0 = vadd.s32 4294967240, %v1656_v37 }
 0x2c4   : > { %v880_v4 = vmax.f32 %v850_v63, 0.0  ;;  %922 = vadd.xlane.f32.xlu0 %v921_v3  ;;  %v902_v6 = vmul.f32 %v1608_v23, %v879_v62  ;;  %v1021_v63 = vsub.s32 %v1018_v53, %v1659_v40 }
 0x2c5   : > { %v878_v7 = vmax.f32 %v842_v2, 0.0  ;;  %925 = vadd.xlane.f32.xlu1 %v924_v5  ;;  %v900_v11 = vmul.f32 %v1608_v23, %v877_v1  ;;  %v1028_v2 = vsub.s32 %v1025_v56, %v1659_v40 }
 0x2c6   : > { %v939_v8 = vsel %vm908_vm3, %v902_v6, 0.0  ;;  %v903_v9 = vmul.f32 %v1608_v23, %v880_v4  ;;  %v1035_v4 = vsub.s32 %v1032_v57, %v1659_v40 }
 0x2c7   : > { %v1307_v10 = vpop.f32.mrb[24].mxu1  ;;  %v901_v15 = vmul.f32 %v1608_v23, %v878_v7  ;;  %v933_v25 = vsel %vm908_vm3, %v900_v11, 0.0 }
 0x2c8   : > { %v863_v12 = vadd.f32 %v1307_v10, %v1601_v17  ;;  %v854_v13 = vpop.f32.mrb[25].mxu1  ;;  %940 = vadd.xlane.f32.xlu0 %v939_v8  ;;  %v942_v14 = vsel %vm908_vm3, %v903_v9, 0.0  ;;  %v1060_v9 = vadd.s32 4294967216, %v1656_v37 }
 0x2c9   : > { %v855_v16 = vadd.f32 %v1601_v17, %v854_v13  ;;  %v1308_v18 = vpop.f32.mrb[26].mxu1  ;;  %943 = vadd.xlane.f32.xlu1 %v942_v14  ;;  %v936_v26 = vsel %vm908_vm3, %v901_v15, 0.0 }
 0x2ca   : > { %v866_v19 = vadd.f32 %v1308_v18, %v1601_v17  ;;  %v857_v20 = vpop.f32.mrb[27].mxu1  ;;  %v883_v21 = vmax.f32 %v863_v12, 0.0  ;;  %v1046_v12 = vadd.s32 4294967232, %v1656_v37  ;;  %v1053_v18 = vadd.s32 4294967224, %v1656_v37 }
 0x2cb   : > { %v881_v22 = vmax.f32 %v855_v16, 0.0  ;;  %v858_v24 = vadd.f32 %v1601_v17, %v857_v20  ;;  %v1067_v16 = vadd.s32 4294967208, %v1656_v37 }
 0x2cc   : > { %934 = vadd.xlane.f32.xlu0 %v933_v25  ;;  %v884_v27 = vmax.f32 %v866_v19, 0.0  ;;  %v906_v32 = vmul.f32 %v1608_v23, %v883_v21  ;;  %v1042_v21 = vsub.s32 %v1039_v0, %v1659_v40 }
 0x2cd   : > { %v882_v28 = vmax.f32 %v858_v24, 0.0  ;;  %937 = vadd.xlane.f32.xlu1 %v936_v26  ;;  %v904_v29 = vmul.f32 %v1608_v23, %v881_v22  ;;  %v1063_v26 = vsub.s32 %v1060_v9, %v1659_v40 }
 0x2ce   : > { %v907_v17 = vmul.f32 %v1608_v23, %v884_v27  ;;  %v951_v34 = vsel %vm908_vm3, %v906_v32, 0.0  ;;  %v1049_v27 = vsub.s32 %v1046_v12, %v1659_v40  ;;  %v1081_v32 = vadd.s32 4294967192, %v1656_v37 }
 0x2cf   : > { %v945_v30 = vsel %vm908_vm3, %v904_v29, 0.0  ;;  %v905_v31 = vmul.f32 %v1608_v23, %v882_v28  ;;  %v1004_v23 = vadd.s32 4294967280, %v1656_v37  ;;  %v1074_v28 = vadd.s32 4294967200, %v1656_v37 }
 0x2d0   : > { %946 = vadd.xlane.f32.xlu0 %v945_v30  ;;  %v954_v35 = vsel %vm908_vm3, %v907_v17, 0.0  ;;  %v1070_v29 = vsub.s32 %v1067_v16, %v1659_v40 }
 0x2d1   : > { %v948_v33 = vsel %vm908_vm3, %v905_v31, 0.0  ;;  %v1007_v49 = vsub.s32 %v1004_v23, %v1659_v40  ;;  %v1056_v31 = vsub.s32 %v1053_v18, %v1659_v40  ;;  %v1077_v23 = vsub.s32 %v1074_v28, %v1659_v40 }
 0x2d2   : > { %949 = vadd.xlane.f32.xlu1 %v948_v33 }
 0x2d4   : > { %952 = vadd.xlane.f32.xlu0 %v951_v34 }
 0x2d6   : > { %955 = vadd.xlane.f32.xlu1 %v954_v35 }
 0x344   : > { %v917_v38 = vpop.xlane.xlu1 %916 }
 0x345   : > { %v911_v41 = vpop.xlane.xlu0 %910  ;;  %v961_v51 = vadd.f32 %v1661_v42, %v917_v38 }
 0x346   : > { %v959_v45 = vadd.f32 %v1661_v42, %v911_v41 }
 0x347   : > { %v1008_v62 = vrot.slane %v961_v51, %v1007_v49  ;;  %v1095_v51 = vadd.s32 4294967176, %v1656_v37 }
 0x348   : > { %v920_v47 = vpop.xlane.xlu1 %919  ;;  %v996_v54 = vrot.slane %v959_v45, %v995_v44 }
 0x349   : > { %v914_v46 = vpop.xlane.xlu0 %913  ;;  %v962_v60 = vadd.f32 %v1661_v42, %v920_v47  ;;  %v1084_v47 = vsub.s32 %v1081_v32, %v1659_v40 }
 0x34a   : > { %v960_v48 = vadd.f32 %v1661_v42, %v914_v46 }
 0x34b   : > { %v1015_v7 = vrot.slane %v962_v60, %v1014_v59 }
 0x34c   : > { %v1001_v52 = vrot.slane %v960_v48, %v1000_v43  ;;  %v1088_v43 = vadd.s32 4294967184, %v1656_v37 }
 0x34d   : > { %v929_v55 = vpop.xlane.xlu0 %928 }
 0x34e   : > { %v932_v58 = vpop.xlane.xlu1 %931  ;;  %v1003_v61 = vsel %vm1002_vm4, %v1001_v52, %v996_v54  ;;  %v965_v10 = vadd.f32 %v1661_v42, %v929_v55 }
 0x34f   : > { %v1010_v3 = vsel %vm1009_vm5, %v1008_v62, %v1003_v61  ;;  %v966_v22 = vadd.f32 %v1661_v42, %v932_v58  ;;  %v1091_v58 = vsub.s32 %v1088_v43, %v1659_v40 }
 0x350   : > { %v1017_v13 = vsel %vm1016_vm6, %v1015_v7, %v1010_v3  ;;  %v1036_v25 = vrot.slane %v965_v10, %v1035_v4 }
 0x351   : > { %v923_v1 = vpop.xlane.xlu0 %922  ;;  %v1043_v36 = vrot.slane %v966_v22, %v1042_v21 }
 0x352   : > { %v963_v5 = vadd.f32 %v1661_v42, %v923_v1  ;;  %v926_v6 = vpop.xlane.xlu1 %925 }
 0x353   : > { %v964_v8 = vadd.f32 %v1661_v42, %v926_v6 }
 0x354   : > { %v1022_v11 = vrot.slane %v963_v5, %v1021_v63  ;;  %v1098_v63 = vsub.s32 %v1095_v51, %v1659_v40 }
 0x355   : > { %v1029_v14 = vrot.slane %v964_v8, %v1028_v2  ;;  %v941_v15 = vpop.xlane.xlu0 %940 }
 0x356   : > { %v1024_v19 = vsel %vm1023_vm7, %v1022_v11, %v1017_v13  ;;  %v944_v20 = vpop.xlane.xlu1 %943  ;;  %v969_v17 = vadd.f32 %v1661_v42, %v941_v15 }
 0x357   : > { %v1031_v24 = vsel %vm1030_vm8, %v1029_v14, %v1024_v19  ;;  %v970_v38 = vadd.f32 %v1661_v42, %v944_v20 }
 0x358   : > { %v1038_v33 = vsel %vm1037_vm9, %v1036_v25, %v1031_v24  ;;  %v1064_v48 = vrot.slane %v969_v17, %v1063_v26 }
 0x359   : > { %v935_v30 = vpop.xlane.xlu0 %934  ;;  %v1045_v44 = vsel %vm1044_vm10, %v1043_v36, %v1038_v33  ;;  %v1071_v52 = vrot.slane %v970_v38, %v1070_v29 }
 0x35a   : > { %v967_v34 = vadd.f32 %v1661_v42, %v935_v30  ;;  %v938_v35 = vpop.xlane.xlu1 %937 }
 0x35b   : > { %v968_v39 = vadd.f32 %v1661_v42, %v938_v35 }
 0x35c   : > { %v1050_v41 = vrot.slane %v967_v34, %v1049_v27 }
 0x35d   : > { %v1057_v45 = vrot.slane %v968_v39, %v1056_v31  ;;  %v947_v46 = vpop.xlane.xlu0 %946 }
 0x35e   : > { %v1052_v49 = vsel %vm1051_vm11, %v1050_v41, %v1045_v44  ;;  %v971_v50 = vadd.f32 %v1661_v42, %v947_v46 }
 0x35f   : > { %v1059_v53 = vsel %vm1058_vm12, %v1057_v45, %v1052_v49  ;;  %v950_v54 = vpop.xlane.xlu1 %949 }
 0x360   : > { %v1066_v55 = vsel %vm1065_vm13, %v1064_v48, %v1059_v53  ;;  %v1078_v56 = vrot.slane %v971_v50, %v1077_v23  ;;  %v972_v57 = vadd.f32 %v1661_v42, %v950_v54 }
 0x361   : > { %v1073_v59 = vsel %vm1072_vm14, %v1071_v52, %v1066_v55  ;;  %v953_v60 = vpop.xlane.xlu0 %952 }
 0x362   : > { %v1080_v37 = vsel %vm1079_vm15, %v1078_v56, %v1073_v59  ;;  %v1085_v61 = vrot.slane %v972_v57, %v1084_v47  ;;  %v973_v62 = vadd.f32 %v1661_v42, %v953_v60 }
 0x363   : > { %v956_v0 = vpop.xlane.xlu1 %955 }
 0x364   : > { %v1087_v1 = vsel %vm1086_vm0, %v1085_v61, %v1080_v37  ;;  %v1092_v2 = vrot.slane %v973_v62, %v1091_v58  ;;  %v974_v3 = vadd.f32 %v1661_v42, %v956_v0 }
 0x366   : > { %v1099_v4 = vrot.slane %v974_v3, %v1098_v63  ;;  %v1094_v5 = vsel %vm1093_vm1, %v1092_v2, %v1087_v1 }
 0x368   : > { %v1101_v40 = vsel %vm1100_vm2, %v1099_v4, %v1094_v5 }
 0x369   : > { %1103 = vst [vmem:[%s338_s26] sm:$0x1] %v1101_v40 }
 0x36a   : > { %1372 = shalt.err (!%p1369_p3)
}
 0x36b   : > { %s1373_s24 = scalar_lea.hbm %s1722_s30, 16  ;;  %s1377_s25 = scalar_lea.hbm %s1775_s9, 48 }
 0x36c   : > { %p1374_p4 = scmp.ne.s32.totalorder %s1722_s30, %s1373_s24  ;;  %p1378_p9 = scmp.lt.u32.totalorder %s1722_s30, %s1775_s9 }
 0x36d   : > { %p1379_p10 = scmp.lt.u32.totalorder %s1377_s25, %s1373_s24  ;;  %p1381_p12 = scmp.lt.u32.totalorder %s1373_s24, %s1722_s30 }
 0x36e   : > { %p1375_p7 = pnand %p1374_p4, %p1512_p5 }
 0x36f   : > { %p1380_p11 = por %p1379_p10, %p1378_p9 }
 0x370   : > { %p1376_p8 = pneg %p1375_p7 }
 0x371   : > { %p1382_p13 = por %p1381_p12, %p1380_p11 }
 0x373   : > { %p1383_p0 = pnand %p1382_p13, %p1376_p8 }
 0x375   : > { %1386 = shalt.err (!%p1383_p0)
}
 0x376   : > { %1313 = dma.vmem_to_hbm [thread:$0]  (%p1512_p5), %s1724_s27, 16, %s1722_s30, %s1105_s10  }
 0x377 PF: > { %p1319_p1 = scmp.ge.s32.totalorder %s1421_s14, 2  ;;  %s1129_s29 = sand.u32 1, %s1409_s11  }
 0x378   : > { %s1130_s8 = scalar_lea.sflag [#allocation4], %s1129_s29 }
 0x379   : > { %p1316_p2 = pnand %p1319_p1, %p1516_p6 }
 0x37b   : > { %1404 = dma.done.wait (!%p1316_p2), %s1130_s8, 16  }
 0x37c   : > { %1406 = vsyncadd (!%p1316_p2), %s1130_s8, 4294967280  ;;  %p20_p3 = scmp.ge.s32.totalorder %s1500_s16, 5   ;;  %s1778_s11 = smov %s1413_s12 }
 0x37d   : > { %s1779_s12 = smov %s1417_s13  ;;  %s1780_s13 = smov %s1510_s19 }
 0x37e   : > { %s1781_s14 = smov %s1500_s16  ;;  %22 = sbr.rel (!%p20_p3) target bundleno = 5 (0x5), region = 91 }
 0x385   :  { %1134 = vsyncpa [#allocation4], 1 }
 0x386   :  { %1136 = vsyncpa [#allocation4 + $0x1], 1 }

</bundles_post_ra>
